<compile_context>
chip_gen: v6e
topology: v6e:2x2x1
jax: 0.10.0
libtpu: 0.0.40
codegen_flags: <defaults>
</compile_context>

<pallas_src>
import functools

import jax
import jax.numpy as jnp
from jax import lax
from jax.experimental import pallas as pl
from jax.experimental.pallas import tpu as pltpu


def _round_up(x, m):
    return ((x + m - 1) // m) * m


def _replicated_spec(arr):
    """Full-array block, broadcast (same block index) across the batch grid axis."""
    n = arr.ndim
    return pl.BlockSpec(arr.shape, lambda b, _n=n: (0,) * _n)


# ----------------------------------------------------------------------------
# Pallas kernel: the whole TCN for one batch element.
# ----------------------------------------------------------------------------
def tcn_fused_kernel(x_ref, *refs, dilations, has_downsample, kernel_size):
    # x_ref : (Cin_p, Lp)   current batch element (channels on sublanes, time on lanes)
    # refs  : per-layer [w1 (Cout_p, K*Cin_p), b1 (Cout_p,1),
    #                    w2 (Cout_p, K*Cout_p), b2 (Cout_p,1),
    #                    (wd (Cout_p, Cin_p), bd (Cout_p,1))?] ... , o_ref (C_last_p, Lp)
    o_ref = refs[-1]
    w_refs = refs[:-1]
    K = kernel_size

    x = x_ref[...]                                   # (Cin_p, Lp) f32
    Lp = x.shape[-1]

    # Hoisted once: (1, Lp) time index row, broadcast over sublanes in the compares.
    t_row = lax.broadcasted_iota(jnp.int32, (1, Lp), 1)

    def causal_conv(inp, w_flat, bias, dilation):
        # inp: (Cin, Lp), w_flat: (Cout, K*Cin), bias: (Cout, 1)
        pieces = []
        for k in range(K):                           # K is tiny & static
            s = (K - 1 - k) * dilation               # causal right-shift (static)
            if s == 0:
                pieces.append(inp)
            elif s >= Lp:
                pieces.append(jnp.zeros_like(inp))
            else:
                rolled = pltpu.roll(inp, s, 1)       # XLU lane rotation (cheap)
                pieces.append(jnp.where(t_row >= s, rolled, 0.0))
        stacked = jnp.concatenate(pieces, axis=0)    # (K*Cin, Lp), sublane-aligned
        acc = jnp.dot(w_flat, stacked, preferred_element_type=jnp.float32)
        return acc + bias                            # (Cout, 1) broadcasts over lanes

    idx = 0
    for li, d in enumerate(dilations):
        w1 = w_refs[idx][...]
        b1 = w_refs[idx + 1][...]
        w2 = w_refs[idx + 2][...]
        b2 = w_refs[idx + 3][...]
        idx += 4

        # conv1 -> chomp -> relu   (dropout = identity in eval mode)
        h = jnp.maximum(causal_conv(x, w1, b1, d), 0.0)
        # conv2 -> chomp -> relu
        h = jnp.maximum(causal_conv(h, w2, b2, d), 0.0)

        if has_downsample[li]:
            wd = w_refs[idx][...]
            bd = w_refs[idx + 1][...]
            idx += 2
            res = jnp.dot(wd, x, preferred_element_type=jnp.float32) + bd
        else:
            # identity residual: no matmul (channel counts match, padding included)
            res = x[: h.shape[0]]

        x = jnp.maximum(h + res, 0.0)

    o_ref[...] = x.astype(o_ref.dtype)


# ----------------------------------------------------------------------------
# Glue: one pallas_call for the whole network.
# ----------------------------------------------------------------------------
def _tcn_forward_impl(x, params, kernel_size=2):
    """x: (B, Cin, L) f32 -> (B, num_channels[-1], L) f32."""
    B, Cin, L = x.shape
    K = kernel_size

    Lp = _round_up(max(L, 128), 128)        # lane-dense time axis
    Cin_p = _round_up(Cin, 8)               # sublane-aligned input channels
    xp = jnp.pad(x.astype(jnp.float32), ((0, 0), (0, Cin_p - Cin), (0, Lp - L)))

    dilations = tuple(2 ** i for i in range(len(params)))
    has_ds = tuple(p["wd"] is not None for p in params)

    flat_args = [xp]
    in_specs = [pl.BlockSpec((None, Cin_p, Lp), lambda b: (b, 0, 0))]

    cin_kernel = Cin_p                      # padded channel count the kernel sees
    cout = Cin
    cout_p = Cin_p
    for li, p in enumerate(params):
        w1, w2 = p["w1"], p["w2"]           # (Cout, Cin, K) / (Cout, Cout, K), weight-norm folded
        cout = w1.shape[0]
        cout_p = _round_up(cout, 8)         # sublane-aligned output channels

        # pad input channels to match the padded activation (zero channels contribute 0)
        w1 = jnp.pad(w1, ((0, cout_p - cout), (0, cin_kernel - w1.shape[1]), (0, 0)))
        w2 = jnp.pad(w2, ((0, cout_p - cout), (0, cout_p - w2.shape[1]), (0, 0)))
        b1 = jnp.pad(p["b1"], (0, cout_p - cout))
        b2 = jnp.pad(p["b2"], (0, cout_p - cout))

        # flatten taps: w_flat[:, k*Cin + c] = w[:, c, k]  (matches the stacked shifted views)
        w1f = jnp.transpose(w1, (0, 2, 1)).reshape(cout_p, K * cin_kernel)
        w2f = jnp.transpose(w2, (0, 2, 1)).reshape(cout_p, K * cout_p)

        layer_args = [
            w1f.astype(jnp.float32),
            b1.reshape(cout_p, 1).astype(jnp.float32),
            w2f.astype(jnp.float32),
            b2.reshape(cout_p, 1).astype(jnp.float32),
        ]
        if has_ds[li]:
            wd = jnp.pad(p["wd"], ((0, cout_p - cout), (0, cin_kernel - p["wd"].shape[1])))
            bd = jnp.pad(p["bd"], (0, cout_p - cout))
            layer_args += [
                wd.astype(jnp.float32),
                bd.reshape(cout_p, 1).astype(jnp.float32),
            ]

        flat_args += layer_args
        in_specs += [_replicated_spec(a) for a in layer_args]
        cin_kernel = cout_p

    C_last, C_last_p = cout, cout_p
    kernel = functools.partial(
        tcn_fused_kernel,
        dilations=dilations,
        has_downsample=has_ds,
        kernel_size=K,
    )

    out_p = pl.pallas_call(
        kernel,
        out_shape=jax.ShapeDtypeStruct((B, C_last_p, Lp), jnp.float32),
        grid_spec=pl.GridSpec(
            grid=(B,),
            in_specs=in_specs,
            out_specs=pl.BlockSpec((None, C_last_p, Lp), lambda b: (b, 0, 0)),
        ),
        compiler_params=pltpu.CompilerParams(dimension_semantics=("parallel",)),
    )(*flat_args)

    return out_p[:, :C_last, :L]


tcn_forward = jax.jit(_tcn_forward_impl, static_argnames=("kernel_size",))


# ----------------------------------------------------------------------------
# Parameter setup (deterministic, synthetic) + weight-norm folding.
# ----------------------------------------------------------------------------
def fold_weight_norm(v, g):
    # PyTorch weight_norm(dim=0): w = g * v / ||v|| with norm over (Cin, K) per output channel.
    norm = jnp.sqrt(jnp.sum(v * v, axis=(1, 2)))
    return (g / norm)[:, None, None] * v


def init_tcn_params(key, num_inputs, num_channels, kernel_size=2):
    params = []
    cin = num_inputs
    for cout in num_channels:
        key, k0, k1, k2, k3, k4, k5, k6, k7 = jax.random.split(key, 9)
        v1 = 0.01 * jax.random.normal(k0, (cout, cin, kernel_size), jnp.float32)
        g1 = jax.random.uniform(k1, (cout,), jnp.float32, 0.5, 1.5)
        b1 = 0.01 * jax.random.normal(k2, (cout,), jnp.float32)
        v2 = 0.01 * jax.random.normal(k3, (cout, cout, kernel_size), jnp.float32)
        g2 = jax.random.uniform(k4, (cout,), jnp.float32, 0.5, 1.5)
        b2 = 0.01 * jax.random.normal(k5, (cout,), jnp.float32)
        if cin != cout:
            wd = 0.01 * jax.random.normal(k6, (cout, cin), jnp.float32)
            bd = 0.01 * jax.random.normal(k7, (cout,), jnp.float32)
        else:
            wd, bd = None, None                     # identity residual: no params, no matmul
        params.append(dict(
            w1=fold_weight_norm(v1, g1),            # (Cout, Cin, K)
            b1=b1,
            w2=fold_weight_norm(v2, g2),            # (Cout, Cout, K)
            b2=b2,
            wd=wd, bd=bd,
        ))
        cin = cout
    return params


# ----------------------------------------------------------------------------
# Pure-JAX reference (for correctness check of the Pallas kernel).
# ----------------------------------------------------------------------------
def ref_causal_conv(x, w, b, dilation):
    # x: (B, Cin, L); w: (Cout, Cin, K); PyTorch conv1d pad=(K-1)*d both sides + chomp(pad).
    B, Cin, L = x.shape
    Cout, _, K = w.shape
    pad = (K - 1) * dilation
    xp = jnp.pad(x, ((0, 0), (0, 0), (pad, 0)))
    y = jnp.zeros((B, Cout, L), jnp.float32)
    for k in range(K):
        y = y + jnp.einsum("oc,bcl->bol", w[:, :, k],
                           xp[:, :, k * dilation:k * dilation + L])
    return y + b[None, :, None]


def ref_tcn_forward(x, params, kernel_size=2):
    out = x
    for i, p in enumerate(params):
        d = 2 ** i
        h = jax.nn.relu(ref_causal_conv(out, p["w1"], p["b1"], d))
        h = jax.nn.relu(ref_causal_conv(h, p["w2"], p["b2"], d))
        if p["wd"] is None:
            res = out
        else:
            res = jnp.einsum("oc,bcl->bol", p["wd"], out) + p["bd"][None, :, None]
        out = jax.nn.relu(h + res)
    return out


# ----------------------------------------------------------------------------
if __name__ == "__main__":
    key = jax.random.PRNGKey(0)
    k_x, k_p = jax.random.split(key)

    batch, num_inputs, seq_len = 2, 4, 16
    num_channels = (8, 16)          # two TemporalBlocks, dilations 1 and 2
    kernel_size = 2

    x = jax.random.normal(k_x, (batch, num_inputs, seq_len), jnp.float32)  # (N, C, L)
    params = init_tcn_params(k_p, num_inputs, num_channels, kernel_size)

    out = jax.block_until_ready(tcn_forward(x, params, kernel_size=kernel_size))
    ref = jax.block_until_ready(ref_tcn_forward(x, params, kernel_size))

    assert out.shape == (batch, num_channels[-1], seq_len), out.shape
    assert jnp.allclose(out, ref, atol=1e-4, rtol=1e-4), \
        f"max abs err {float(jnp.max(jnp.abs(out - ref)))}"

    print("KERNEL_OK")
</pallas_src>

<mosaic_0001>
module attributes {stable_mosaic.version = 11 : i64} {
  func.func @tcn_fused_kernel(%arg0: i32, %arg1: memref<1x8x128xf32, #tpu.memory_space<vmem>>, %arg2: memref<8x16xf32, #tpu.memory_space<vmem>>, %arg3: memref<8x1xf32, #tpu.memory_space<vmem>>, %arg4: memref<8x16xf32, #tpu.memory_space<vmem>>, %arg5: memref<8x1xf32, #tpu.memory_space<vmem>>, %arg6: memref<8x8xf32, #tpu.memory_space<vmem>>, %arg7: memref<8x1xf32, #tpu.memory_space<vmem>>, %arg8: memref<16x16xf32, #tpu.memory_space<vmem>>, %arg9: memref<16x1xf32, #tpu.memory_space<vmem>>, %arg10: memref<16x32xf32, #tpu.memory_space<vmem>>, %arg11: memref<16x1xf32, #tpu.memory_space<vmem>>, %arg12: memref<16x8xf32, #tpu.memory_space<vmem>>, %arg13: memref<16x1xf32, #tpu.memory_space<vmem>>, %arg14: memref<1x16x128xf32, #tpu.memory_space<vmem>>) attributes {dimension_semantics = [#tpu.dimension_semantics<parallel>], iteration_bounds = array<i64: 2>, scalar_prefetch = 0 : i64, scratch_operands = 0 : i64, tpu.core_type = #tpu.core_type<tc>, window_params = [{transform_indices = @transform_0, window_bounds = array<i64: 1, 8, 128>}, {pipeline_mode = #tpu.pipeline_mode<synchronous>, transform_indices = @transform_1, window_bounds = array<i64: 8, 16>}, {pipeline_mode = #tpu.pipeline_mode<synchronous>, transform_indices = @transform_2, window_bounds = array<i64: 8, 1>}, {pipeline_mode = #tpu.pipeline_mode<synchronous>, transform_indices = @transform_3, window_bounds = array<i64: 8, 16>}, {pipeline_mode = #tpu.pipeline_mode<synchronous>, transform_indices = @transform_4, window_bounds = array<i64: 8, 1>}, {pipeline_mode = #tpu.pipeline_mode<synchronous>, transform_indices = @transform_5, window_bounds = array<i64: 8, 8>}, {pipeline_mode = #tpu.pipeline_mode<synchronous>, transform_indices = @transform_6, window_bounds = array<i64: 8, 1>}, {pipeline_mode = #tpu.pipeline_mode<synchronous>, transform_indices = @transform_7, window_bounds = array<i64: 16, 16>}, {pipeline_mode = #tpu.pipeline_mode<synchronous>, transform_indices = @transform_8, window_bounds = array<i64: 16, 1>}, {pipeline_mode = #tpu.pipeline_mode<synchronous>, transform_indices = @transform_9, window_bounds = array<i64: 16, 32>}, {pipeline_mode = #tpu.pipeline_mode<synchronous>, transform_indices = @transform_10, window_bounds = array<i64: 16, 1>}, {pipeline_mode = #tpu.pipeline_mode<synchronous>, transform_indices = @transform_11, window_bounds = array<i64: 16, 8>}, {pipeline_mode = #tpu.pipeline_mode<synchronous>, transform_indices = @transform_12, window_bounds = array<i64: 16, 1>}, {transform_indices = @transform_13, window_bounds = array<i64: 1, 16, 128>}]} {
    %c0 = arith.constant 0 : index
    %c0_0 = arith.constant 0 : index
    %c0_1 = arith.constant 0 : index
    %0 = vector.load %arg1[%c0, %c0_0, %c0_1] : memref<1x8x128xf32, #tpu.memory_space<vmem>>, vector<1x8x128xf32>
    %1 = vector.shape_cast %0 : vector<1x8x128xf32> to vector<8x128xf32>
    %2 = tpu.iota {dimensions = array<i32: 1>} : vector<1x128xi32>
    %c0_2 = arith.constant 0 : index
    %c0_3 = arith.constant 0 : index
    %3 = vector.load %arg2[%c0_2, %c0_3] : memref<8x16xf32, #tpu.memory_space<vmem>>, vector<8x16xf32>
    %c0_4 = arith.constant 0 : index
    %c0_5 = arith.constant 0 : index
    %4 = vector.load %arg3[%c0_4, %c0_5] : memref<8x1xf32, #tpu.memory_space<vmem>>, vector<8x1xf32>
    %c0_6 = arith.constant 0 : index
    %c0_7 = arith.constant 0 : index
    %5 = vector.load %arg4[%c0_6, %c0_7] : memref<8x16xf32, #tpu.memory_space<vmem>>, vector<8x16xf32>
    %c0_8 = arith.constant 0 : index
    %c0_9 = arith.constant 0 : index
    %6 = vector.load %arg5[%c0_8, %c0_9] : memref<8x1xf32, #tpu.memory_space<vmem>>, vector<8x1xf32>
    %c1_i32 = arith.constant 1 : i32
    %7 = tpu.dynamic_rotate %1 by %c1_i32 dim 1 : vector<8x128xf32>, i32 -> vector<8x128xf32>
    %c1_i32_10 = arith.constant 1 : i32
    %8 = vector.broadcast %c1_i32_10 : i32 to vector<1x128xi32>
    %9 = arith.cmpi sge, %2, %8 : vector<1x128xi32>
    %cst = arith.constant 0.000000e+00 : f32
    %10 = vector.shape_cast %9 : vector<1x128xi1> to vector<1x128xi1>
    %11 = vector.broadcast %10 : vector<1x128xi1> to vector<8x128xi1>
    %12 = vector.broadcast %cst : f32 to vector<8x128xf32>
    %13 = arith.select %11, %7, %12 : vector<8x128xi1>, vector<8x128xf32>
    %14 = tpu.concatenate %13, %1 in 0 : vector<8x128xf32>, vector<8x128xf32> -> vector<16x128xf32>
    %cst_11 = arith.constant dense<0.000000e+00> : vector<8x128xf32>
    %15 = tpu.matmul %3, %14, %cst_11 {dimension_numbers = #tpu.dot_dimension_numbers<[1], [0], [0], [1], [0, 0, 1, 1], [], []>} : vector<8x16xf32>, vector<16x128xf32>, vector<8x128xf32> -> vector<8x128xf32>
    %16 = vector.broadcast %4 : vector<8x1xf32> to vector<8x128xf32>
    %17 = arith.addf %15, %16 : vector<8x128xf32>
    %cst_12 = arith.constant 0.000000e+00 : f32
    %18 = vector.broadcast %cst_12 : f32 to vector<8x128xf32>
    %19 = arith.maximumf %17, %18 : vector<8x128xf32>
    %c1_i32_13 = arith.constant 1 : i32
    %20 = tpu.dynamic_rotate %19 by %c1_i32_13 dim 1 : vector<8x128xf32>, i32 -> vector<8x128xf32>
    %c1_i32_14 = arith.constant 1 : i32
    %21 = vector.broadcast %c1_i32_14 : i32 to vector<1x128xi32>
    %22 = arith.cmpi sge, %2, %21 : vector<1x128xi32>
    %cst_15 = arith.constant 0.000000e+00 : f32
    %23 = vector.shape_cast %22 : vector<1x128xi1> to vector<1x128xi1>
    %24 = vector.broadcast %23 : vector<1x128xi1> to vector<8x128xi1>
    %25 = vector.broadcast %cst_15 : f32 to vector<8x128xf32>
    %26 = arith.select %24, %20, %25 : vector<8x128xi1>, vector<8x128xf32>
    %27 = tpu.concatenate %26, %19 in 0 : vector<8x128xf32>, vector<8x128xf32> -> vector<16x128xf32>
    %cst_16 = arith.constant dense<0.000000e+00> : vector<8x128xf32>
    %28 = tpu.matmul %5, %27, %cst_16 {dimension_numbers = #tpu.dot_dimension_numbers<[1], [0], [0], [1], [0, 0, 1, 1], [], []>} : vector<8x16xf32>, vector<16x128xf32>, vector<8x128xf32> -> vector<8x128xf32>
    %29 = vector.broadcast %6 : vector<8x1xf32> to vector<8x128xf32>
    %30 = arith.addf %28, %29 : vector<8x128xf32>
    %cst_17 = arith.constant 0.000000e+00 : f32
    %31 = vector.broadcast %cst_17 : f32 to vector<8x128xf32>
    %32 = arith.maximumf %30, %31 : vector<8x128xf32>
    %c0_18 = arith.constant 0 : index
    %c0_19 = arith.constant 0 : index
    %33 = vector.load %arg6[%c0_18, %c0_19] : memref<8x8xf32, #tpu.memory_space<vmem>>, vector<8x8xf32>
    %c0_20 = arith.constant 0 : index
    %c0_21 = arith.constant 0 : index
    %34 = vector.load %arg7[%c0_20, %c0_21] : memref<8x1xf32, #tpu.memory_space<vmem>>, vector<8x1xf32>
    %cst_22 = arith.constant dense<0.000000e+00> : vector<8x128xf32>
    %35 = tpu.matmul %33, %1, %cst_22 {dimension_numbers = #tpu.dot_dimension_numbers<[1], [0], [0], [1], [0, 0, 1, 1], [], []>} : vector<8x8xf32>, vector<8x128xf32>, vector<8x128xf32> -> vector<8x128xf32>
    %36 = vector.broadcast %34 : vector<8x1xf32> to vector<8x128xf32>
    %37 = arith.addf %35, %36 : vector<8x128xf32>
    %38 = arith.addf %32, %37 : vector<8x128xf32>
    %cst_23 = arith.constant 0.000000e+00 : f32
    %39 = vector.broadcast %cst_23 : f32 to vector<8x128xf32>
    %40 = arith.maximumf %38, %39 : vector<8x128xf32>
    %c0_24 = arith.constant 0 : index
    %c0_25 = arith.constant 0 : index
    %41 = vector.load %arg8[%c0_24, %c0_25] : memref<16x16xf32, #tpu.memory_space<vmem>>, vector<16x16xf32>
    %c0_26 = arith.constant 0 : index
    %c0_27 = arith.constant 0 : index
    %42 = vector.load %arg9[%c0_26, %c0_27] : memref<16x1xf32, #tpu.memory_space<vmem>>, vector<16x1xf32>
    %c0_28 = arith.constant 0 : index
    %c0_29 = arith.constant 0 : index
    %43 = vector.load %arg10[%c0_28, %c0_29] : memref<16x32xf32, #tpu.memory_space<vmem>>, vector<16x32xf32>
    %c0_30 = arith.constant 0 : index
    %c0_31 = arith.constant 0 : index
    %44 = vector.load %arg11[%c0_30, %c0_31] : memref<16x1xf32, #tpu.memory_space<vmem>>, vector<16x1xf32>
    %c2_i32 = arith.constant 2 : i32
    %45 = tpu.dynamic_rotate %40 by %c2_i32 dim 1 : vector<8x128xf32>, i32 -> vector<8x128xf32>
    %c2_i32_32 = arith.constant 2 : i32
    %46 = vector.broadcast %c2_i32_32 : i32 to vector<1x128xi32>
    %47 = arith.cmpi sge, %2, %46 : vector<1x128xi32>
    %cst_33 = arith.constant 0.000000e+00 : f32
    %48 = vector.shape_cast %47 : vector<1x128xi1> to vector<1x128xi1>
    %49 = vector.broadcast %48 : vector<1x128xi1> to vector<8x128xi1>
    %50 = vector.broadcast %cst_33 : f32 to vector<8x128xf32>
    %51 = arith.select %49, %45, %50 : vector<8x128xi1>, vector<8x128xf32>
    %52 = tpu.concatenate %51, %40 in 0 : vector<8x128xf32>, vector<8x128xf32> -> vector<16x128xf32>
    %cst_34 = arith.constant dense<0.000000e+00> : vector<16x128xf32>
    %53 = tpu.matmul %41, %52, %cst_34 {dimension_numbers = #tpu.dot_dimension_numbers<[1], [0], [0], [1], [0, 0, 1, 1], [], []>} : vector<16x16xf32>, vector<16x128xf32>, vector<16x128xf32> -> vector<16x128xf32>
    %54 = vector.broadcast %42 : vector<16x1xf32> to vector<16x128xf32>
    %55 = arith.addf %53, %54 : vector<16x128xf32>
    %cst_35 = arith.constant 0.000000e+00 : f32
    %56 = vector.broadcast %cst_35 : f32 to vector<16x128xf32>
    %57 = arith.maximumf %55, %56 : vector<16x128xf32>
    %c2_i32_36 = arith.constant 2 : i32
    %58 = tpu.dynamic_rotate %57 by %c2_i32_36 dim 1 : vector<16x128xf32>, i32 -> vector<16x128xf32>
    %c2_i32_37 = arith.constant 2 : i32
    %59 = vector.broadcast %c2_i32_37 : i32 to vector<1x128xi32>
    %60 = arith.cmpi sge, %2, %59 : vector<1x128xi32>
    %cst_38 = arith.constant 0.000000e+00 : f32
    %61 = vector.shape_cast %60 : vector<1x128xi1> to vector<1x128xi1>
    %62 = vector.broadcast %61 : vector<1x128xi1> to vector<16x128xi1>
    %63 = vector.broadcast %cst_38 : f32 to vector<16x128xf32>
    %64 = arith.select %62, %58, %63 : vector<16x128xi1>, vector<16x128xf32>
    %65 = tpu.concatenate %64, %57 in 0 : vector<16x128xf32>, vector<16x128xf32> -> vector<32x128xf32>
    %cst_39 = arith.constant dense<0.000000e+00> : vector<16x128xf32>
    %66 = tpu.matmul %43, %65, %cst_39 {dimension_numbers = #tpu.dot_dimension_numbers<[1], [0], [0], [1], [0, 0, 1, 1], [], []>} : vector<16x32xf32>, vector<32x128xf32>, vector<16x128xf32> -> vector<16x128xf32>
    %67 = vector.broadcast %44 : vector<16x1xf32> to vector<16x128xf32>
    %68 = arith.addf %66, %67 : vector<16x128xf32>
    %cst_40 = arith.constant 0.000000e+00 : f32
    %69 = vector.broadcast %cst_40 : f32 to vector<16x128xf32>
    %70 = arith.maximumf %68, %69 : vector<16x128xf32>
    %c0_41 = arith.constant 0 : index
    %c0_42 = arith.constant 0 : index
    %71 = vector.load %arg12[%c0_41, %c0_42] : memref<16x8xf32, #tpu.memory_space<vmem>>, vector<16x8xf32>
    %c0_43 = arith.constant 0 : index
    %c0_44 = arith.constant 0 : index
    %72 = vector.load %arg13[%c0_43, %c0_44] : memref<16x1xf32, #tpu.memory_space<vmem>>, vector<16x1xf32>
    %cst_45 = arith.constant dense<0.000000e+00> : vector<16x128xf32>
    %73 = tpu.matmul %71, %40, %cst_45 {dimension_numbers = #tpu.dot_dimension_numbers<[1], [0], [0], [1], [0, 0, 1, 1], [], []>} : vector<16x8xf32>, vector<8x128xf32>, vector<16x128xf32> -> vector<16x128xf32>
    %74 = vector.broadcast %72 : vector<16x1xf32> to vector<16x128xf32>
    %75 = arith.addf %73, %74 : vector<16x128xf32>
    %76 = arith.addf %70, %75 : vector<16x128xf32>
    %cst_46 = arith.constant 0.000000e+00 : f32
    %77 = vector.broadcast %cst_46 : f32 to vector<16x128xf32>
    %78 = arith.maximumf %76, %77 : vector<16x128xf32>
    %c0_47 = arith.constant 0 : index
    %c0_48 = arith.constant 0 : index
    %c0_49 = arith.constant 0 : index
    %79 = vector.load %arg14[%c0_47, %c0_48, %c0_49] : memref<1x16x128xf32, #tpu.memory_space<vmem>>, vector<1x16x128xf32>
    %80 = vector.shape_cast %79 : vector<1x16x128xf32> to vector<16x128xf32>
    %81 = vector.shape_cast %78 : vector<16x128xf32> to vector<1x16x128xf32>
    tpu.vector_store %arg14[%c0_47, %c0_48, %c0_49], %81 {strides = array<i32>} : memref<1x16x128xf32, #tpu.memory_space<vmem>>, vector<1x16x128xf32>,
    return
  }
  func.func @transform_0(%arg0: i32) -> (i32, i32, i32) {
    %c0_i32 = arith.constant 0 : i32
    %c0_i32_0 = arith.constant 0 : i32
    %c0_i32_1 = arith.constant 0 : i32
    return %arg0, %c0_i32, %c0_i32_0 : i32, i32, i32
  }
  func.func @transform_1(%arg0: i32) -> (i32, i32) {
    %c0_i32 = arith.constant 0 : i32
    %c0_i32_0 = arith.constant 0 : i32
    %c0_i32_1 = arith.constant 0 : i32
    return %c0_i32, %c0_i32_0 : i32, i32
  }
  func.func @transform_2(%arg0: i32) -> (i32, i32) {
    %c0_i32 = arith.constant 0 : i32
    %c0_i32_0 = arith.constant 0 : i32
    %c0_i32_1 = arith.constant 0 : i32
    return %c0_i32, %c0_i32_0 : i32, i32
  }
  func.func @transform_3(%arg0: i32) -> (i32, i32) {
    %c0_i32 = arith.constant 0 : i32
    %c0_i32_0 = arith.constant 0 : i32
    %c0_i32_1 = arith.constant 0 : i32
    return %c0_i32, %c0_i32_0 : i32, i32
  }
  func.func @transform_4(%arg0: i32) -> (i32, i32) {
    %c0_i32 = arith.constant 0 : i32
    %c0_i32_0 = arith.constant 0 : i32
    %c0_i32_1 = arith.constant 0 : i32
    return %c0_i32, %c0_i32_0 : i32, i32
  }
  func.func @transform_5(%arg0: i32) -> (i32, i32) {
    %c0_i32 = arith.constant 0 : i32
    %c0_i32_0 = arith.constant 0 : i32
    %c0_i32_1 = arith.constant 0 : i32
    return %c0_i32, %c0_i32_0 : i32, i32
  }
  func.func @transform_6(%arg0: i32) -> (i32, i32) {
    %c0_i32 = arith.constant 0 : i32
    %c0_i32_0 = arith.constant 0 : i32
    %c0_i32_1 = arith.constant 0 : i32
    return %c0_i32, %c0_i32_0 : i32, i32
  }
  func.func @transform_7(%arg0: i32) -> (i32, i32) {
    %c0_i32 = arith.constant 0 : i32
    %c0_i32_0 = arith.constant 0 : i32
    %c0_i32_1 = arith.constant 0 : i32
    return %c0_i32, %c0_i32_0 : i32, i32
  }
  func.func @transform_8(%arg0: i32) -> (i32, i32) {
    %c0_i32 = arith.constant 0 : i32
    %c0_i32_0 = arith.constant 0 : i32
    %c0_i32_1 = arith.constant 0 : i32
    return %c0_i32, %c0_i32_0 : i32, i32
  }
  func.func @transform_9(%arg0: i32) -> (i32, i32) {
    %c0_i32 = arith.constant 0 : i32
    %c0_i32_0 = arith.constant 0 : i32
    %c0_i32_1 = arith.constant 0 : i32
    return %c0_i32, %c0_i32_0 : i32, i32
  }
  func.func @transform_10(%arg0: i32) -> (i32, i32) {
    %c0_i32 = arith.constant 0 : i32
    %c0_i32_0 = arith.constant 0 : i32
    %c0_i32_1 = arith.constant 0 : i32
    return %c0_i32, %c0_i32_0 : i32, i32
  }
  func.func @transform_11(%arg0: i32) -> (i32, i32) {
    %c0_i32 = arith.constant 0 : i32
    %c0_i32_0 = arith.constant 0 : i32
    %c0_i32_1 = arith.constant 0 : i32
    return %c0_i32, %c0_i32_0 : i32, i32
  }
  func.func @transform_12(%arg0: i32) -> (i32, i32) {
    %c0_i32 = arith.constant 0 : i32
    %c0_i32_0 = arith.constant 0 : i32
    %c0_i32_1 = arith.constant 0 : i32
    return %c0_i32, %c0_i32_0 : i32, i32
  }
  func.func @transform_13(%arg0: i32) -> (i32, i32, i32) {
    %c0_i32 = arith.constant 0 : i32
    %c0_i32_0 = arith.constant 0 : i32
    %c0_i32_1 = arith.constant 0 : i32
    return %arg0, %c0_i32, %c0_i32_0 : i32, i32, i32
  }
}

</mosaic_0001>

<bundles_post_ra>
// kernel: _tcn_forward_impl.1
= control target key start
LH: loop header
LB: loop body
LE: loop exit
PB: predicated region body
PF: predicated region fallthrough
CT: control target
= control target key end

     0   :  { %s1546_s0 = inlined_call_operand.vmem [shape: f32[2,8,128], index: 0, kind: input, shape index: {}]   ;;  %s1547_s1 = inlined_call_operand.vmem [shape: f32[8,16], index: 1, kind: input, shape index: {}]   ;;  %s1548_s2 = inlined_call_operand.vmem [shape: f32[8,1], index: 2, kind: input, shape index: {}]   ;;  %s1549_s3 = inlined_call_operand.vmem [shape: f32[8,16], index: 3, kind: input, shape index: {}]   ;;  %s1550_s4 = inlined_call_operand.vmem [shape: f32[8,1], index: 4, kind: input, shape index: {}]   ;;  %s1551_s5 = inlined_call_operand.vmem [shape: f32[8,8], index: 5, kind: input, shape index: {}]   ;;  %s1552_s6 = inlined_call_operand.vmem [shape: f32[8,1], index: 6, kind: input, shape index: {}]   ;;  %s1553_s7 = inlined_call_operand.vmem [shape: f32[16,16], index: 7, kind: input, shape index: {}]   ;;  %s1554_s8 = inlined_call_operand.vmem [shape: f32[16,1], index: 8, kind: input, shape index: {}]   ;;  %s1555_s9 = inlined_call_operand.vmem [shape: f32[16,32], index: 9, kind: input, shape index: {}]   ;;  %s1556_s10 = inlined_call_operand.vmem [shape: f32[16,1], index: 10, kind: input, shape index: {}]   ;;  %s1557_s11 = inlined_call_operand.vmem [shape: f32[16,8], index: 11, kind: input, shape index: {}]   ;;  %s1558_s12 = inlined_call_operand.vmem [shape: f32[16,1], index: 12, kind: input, shape index: {}]   ;;  %s1559_s13 = inlined_call_operand.hbm [shape: f32[2,16,128], index: 13, kind: output, shape index: {}]  }
   0x1   :  { %1560 = sst [smem:[#allocation6_spill]] %s1546_s0 }
   0x2   :  { %1561 = sst [smem:[#allocation7_spill]] %s1547_s1 }
   0x3   :  { %18 = vsyncpa [#allocation3], 0 }
   0x4   :  { %20 = vsyncpa [#allocation3 + $0x1], 0  ;;  %s1355_s25 = smov 0   ;;  %s1357_s26 = smov 0  }
   0x5   :  { %s1359_s27 = smov 0   ;;  %s1361_s28 = smov 0  }
   0x6 LB: > { %s1376_s29 = sadd.s32 4294967295, %s1275_s28   ;;  %s1078_s30 = sadd.s32 4294967294, %s1275_s28   ;;  %s1275_s28 = sphi %s1361_s28, %s1571_s28   ;;  %s1271_s27 = sphi %s1359_s27, %s1570_s27   ;;  %s1267_s26 = sphi %s1357_s26, %s1569_s26   ;;  %s1263_s25 = sphi %s1355_s25, %s1568_s25  }
   0x7   : > { %s1380_s14 = sadd.s32 1, %s1275_s28   ;;  %s311_s15 = sadd.s32 1, %s1271_s27 }
   0x8   : > { %s308_s16 = ssub.s32 %s1275_s28, %s1380_s14  ;;  %p321_p0 = scmp.ne.s32.totalorder %s1271_s27, %s1267_s26 }
   0x9   : > { %p309_p1 = scmp.eq.s32.totalorder %s308_s16, 0  ;;  %p322_p2 = scmp.eq.s32.totalorder %s1376_s29, 1 }
   0xa   : > { %p327_p3 = scmp.ne.s32.totalorder %s1267_s26, %s1263_s25  ;;  %p328_p4 = scmp.eq.s32.totalorder %s1078_s30, 1 }
   0xb   : > { %s1391_s17 = scalar_select %p309_p1, %s1271_s27, %s311_s15  }
   0xc   : > { %p1393_p5 = por %p322_p2, %p321_p0  ;;  %p1397_p6 = por %p328_p4, %p327_p3 }
   0xd   : > { %1562 = sst [smem:[#allocation5_spill]] %s1391_s17  ;;  %p1081_p7 = scmp.ge.s32.totalorder %s1275_s28, 1 }
   0xe   : > { %p389_p8 = scmp.lt.s32.totalorder %s1275_s28, 3 }
  0x10   : > { %p390_p9 = pnand %p1081_p7, %p389_p8 }
  0x11   : > { %p432_p10 = scmp.lt.s32.totalorder (!%p390_p9), %s1376_s29, 1  ;;  %s1565_s0 = sld [smem:[#allocation6_spill]] (!%p390_p9) }
  0x12   : > { %393 = sbr.rel (%p390_p9) target bundleno = 1308 (0x51c), region = 72  ;;  %s1280_s30 = smov (!%p390_p9), 1  }
  0x13   : > { %s1566_s1 = sld [smem:[#allocation7_spill]] (!%p390_p9)  ;;  %s1281_s23 = smov (!%p390_p9), 2  }
  0x14   : > { %s1103_s17 = sshll.u32 (!%p390_p9), %s1376_s29, 8 }
  0x17   : > { %v1277_v0 = vmov 0.0   ;;  %vm1278_vm0 = vmmov 0   ;;  %s433_s20 = scalar_select %p432_p10, %s1376_s29, 1  ;;  %v1279_v1 = vmov 0   ;;  %v440_v3 = vld [vmem:[%s1548_s2] sm:$0xff]  ;;  %v437_v4 = vlaneseq  ;;  %v697_v16 = vld [vmem:[%s1554_s8 + $0x8] sm:$0xff] }
  0x18   : > { %1125 = vmatprep.subr.mxu0 %v1277_v0  ;;  %1129 = vmatprep.mubr.msk.f32.mxu0 %vm1278_vm0, %v1277_v0  ;;  %vm454_vm2 = vcmask 130048   ;;  %v611_v8 = vld [vmem:[%s1551_s5] sm:$0xff]  ;;  %vm618_vm3 = vcmask 64512   ;;  %v695_v33 = vld [vmem:[%s1553_s7 + $0x8] sm:$0xff]  ;;  %vm817_vm5 = vcmask 261120   ;;  %s1282_s29 = smov [#allocation2]  }
  0x19   : > { %1213 = vset.pattern.permute.xlu0 %v1279_v1  ;;  %1132 = vmatprep.subr.mxu1 %v1277_v0  ;;  %s1083_s21 = sshll.u32 %s433_s20, 3  ;;  %v1413_v5 = vand.u32 127, %v437_v4  ;;  %v439_v6 = vld [vmem:[%s1566_s1] sm:$0xff]  ;;  %v902_v35 = vld [vmem:[%s1557_s11 + $0x8] sm:$0xff]  ;;  %s429_s20 = sand.u32 1, %s1267_s26  }
  0x1a   : > { %1136 = vmatprep.mubr.msk.f32.mxu1 %vm1278_vm0, %v1277_v0  ;;  %1214 = vset.pattern.permute.xlu1 %v1279_v1  ;;  %s435_s24 = scalar_lea.vmem %s1565_s0, %s1083_s21  ;;  %v442_v14 = vld [vmem:[%s1550_s4] sm:$0xff]  ;;  %v701_v46 = vld [vmem:[%s1556_s10 + $0x8] sm:$0xff]  ;;  %s1506_s16 = scalar_lea.sflag [#allocation3], %s429_s20 }
  0x1b   : > { %v436_v2 = vld [vmem:[%s435_s24] sm:$0xff]  ;;  %vm445_vm1 = vcmp.ge.s32.totalorder %v1413_v5, 1  ;;  %vm704_vm4 = vcmp.ge.s32.totalorder %v1413_v5, 2  ;;  %v904_v48 = vld [vmem:[%s1558_s12 + $0x8] sm:$0xff]  ;;  %s1219_s0 = sshll.u32 %s1282_s29, 4  ;;  %s1220_s0 = int_to_ptr.vmem [resolvable:$false] %s1219_s0 }
  0x1c   : > { %443 = vrot.lane.b32.xlu0 %v436_v2, %s1280_s30  ;;  %1126 = vmatpush3.msra.mxu0 %v436_v2  ;;  %v612_v15 = vld [vmem:[%s1552_s6] sm:$0xff]  ;;  %v699_v51 = vld [vmem:[%s1555_s9 + $0x8] sm:$0xff]  ;;  %s1221_s1 = scalar_lea.vmem %s1220_s0, 512 }
  0x1d   : > { %1127 = vmatprep.subr.mxu0 %v1277_v0  ;;  %v441_v19 = vld [vmem:[%s1549_s3] sm:$0xff] }
  0x1e   : > { %v694_v22 = vld [vmem:[%s1553_s7] sm:$0xff] }
  0x1f   : > { %v696_v31 = vld [vmem:[%s1554_s8] sm:$0xff] }
  0x20   : > { %451 = vperm.xlu0 %1213, %v440_v3   ;;  %v901_v34 = vld [vmem:[%s1557_s11] sm:$0xff] }
  0x21   : > { %v698_v36 = vld [vmem:[%s1555_s9] sm:$0xff] }
  0x22   : > { %v700_v45 = vld [vmem:[%s1556_s10] sm:$0xff] }
  0x23   : > { %v903_v47 = vld [vmem:[%s1558_s12] sm:$0xff] }
  0x8e   : > { %v444_v7 = vpop.permute.xlu0 %443 }
  0x8f   : > { %1128 = vmatpush3.msk.msra.mxu0 %vm445_vm1, %v444_v7 }
  0x90   : > { %1130 = vmatmul.mubr.msk.f32.vlgmr.msra.gmra.mxu0 %vm454_vm2, %v439_v6  ;;  %1139 = vmatprep.subr.mxu0 %v1277_v0 }
  0x91   : > { %1140 = vmatpush3.msra.mxu0 %v436_v2  ;;  %1141 = vmatprep.mubr.msk.f32.mxu0 %vm1278_vm0, %v1277_v0 }
  0x94   : > { %1142 = vmatmul.mubr.msk.f32.vlgmr.msra.gmra.mxu0 %vm618_vm3, %v611_v8 }
  0x95   : > { %1159 = vmatprep.mubr.msk.f32.mxu0 %vm817_vm5, %v698_v36 }
  0x9b   : > { %v452_v9 = vpop.permute.xlu0 %451 }
 0x150   : > { %v524_v10 = vpop.f32.mrf.mxu0 }
 0x151   : > { %v525_v11 = vadd.f32 %v524_v10, %v452_v9 }
 0x152   : > { %v1131_v12 = vpop.f32.mrf.mxu0 }
 0x153   : > { %v528_v13 = vmax.f32 %v525_v11, 0.0 }
 0x154   : > { %v688_v17 = vpop.f32.mrf.mxu0 }
 0x155   : > { %529 = vrot.lane.b32.xlu1 %v528_v13, %s1280_s30  ;;  %1133 = vmatpush3.msra.mxu1 %v528_v13  ;;  %s1082_s30 = sshll.u32 %s429_s20, 4 }
 0x156   : > { %1134 = vmatprep.subr.mxu1 %v1277_v0  ;;  %v1143_v18 = vpop.f32.mrf.mxu0  ;;  %s431_s21 = scalar_lea.vmem [#allocation2], %s1082_s30 }
 0x157   : > { %s1016_s22 = sshll.u32 %s431_s21, 4  ;;  %s1499_s22 = int_to_ptr.vmem [resolvable:$true] %s1016_s22 }
 0x158   : > { %s1215_s30 = scalar_lea.vmem %s1499_s22, 256  ;;  %p1222_p0 = scmp.lt.s32.totalorder %s1499_s22, %s1220_s0 }
 0x159   : > { %534 = vperm.xlu1 %1214, %v442_v14   ;;  %p1216_p11 = scmp.ne.s32.totalorder %s1499_s22, %s1215_s30  ;;  %p1223_p1 = scmp.lt.s32.totalorder %s1221_s1, %s1215_s30 }
 0x15b   : > { %p1217_p12 = pnand %p1216_p11, %p1393_p5  ;;  %p1224_p2 = por %p1223_p1, %p1222_p0 }
 0x15d   : > { %615 = vperm.xlu1 %1214, %v612_v15   ;;  %p1218_p13 = pneg %p1217_p12 }
 0x15f   : > { %p1225_p3 = pnand %p1224_p2, %p1218_p13 }
 0x161   : > { %715 = vperm.xlu1 %1214, %v697_v16  }
 0x1c7   : > { %v530_v20 = vpop.permute.xlu1 %529 }
 0x1c8   : > { %1135 = vmatpush3.msk.msra.mxu1 %vm445_vm1, %v530_v20 }
 0x1c9   : > { %1137 = vmatmul.mubr.msk.f32.vlgmr.msra.gmra.mxu1 %vm454_vm2, %v441_v19 }
 0x1ca   : > { %1148 = vmatprep.mubr.msk.f32.mxu1 %vm454_vm2, %v694_v22 }
 0x1d4   : > { %v535_v21 = vpop.permute.xlu1 %534 }
 0x1d8   : > { %v616_v25 = vpop.permute.xlu1 %615 }
 0x1d9   : > { %v689_v27 = vadd.f32 %v688_v17, %v616_v25 }
 0x1dc   : > { %v716_v37 = vpop.permute.xlu1 %715 }
 0x289   : > { %v606_v23 = vpop.f32.mrf.mxu1 }
 0x28a   : > { %v607_v24 = vadd.f32 %v606_v23, %v535_v21 }
 0x28b   : > { %v1138_v26 = vpop.f32.mrf.mxu1 }
 0x28c   : > { %v610_v28 = vmax.f32 %v607_v24, 0.0 }
 0x28e   : > { %v692_v29 = vadd.f32 %v689_v27, %v610_v28 }
 0x290   : > { %v693_v30 = vmax.f32 %v692_v29, 0.0 }
 0x292   : > { %702 = vrot.lane.b32.xlu0 %v693_v30, %s1281_s23  ;;  %1144 = vmatprep.subr.mxu1 %v693_v30 }
 0x293   : > { %1145 = vmatpush3.msra.mxu1 %v693_v30 }
 0x296   : > { %710 = vperm.xlu0 %1213, %v696_v31  }
 0x304   : > { %v703_v32 = vpop.permute.xlu0 %702 }
 0x305   : > { %1146 = vmatprep.subr.msk.mxu1 %vm704_vm4, %v703_v32 }
 0x306   : > { %1147 = vmatpush3.msk.msra.mxu1 %vm704_vm4, %v703_v32 }
 0x307   : > { %1149 = vmatmul.mubr.msk.f32.vlgmr.msra.gmra.mxu1 %vm454_vm2, %v695_v33  ;;  %1162 = vmatprep.subr.mxu1 %v693_v30 }
 0x308   : > { %1163 = vmatpush3.msra.mxu1 %v693_v30  ;;  %1164 = vmatprep.mubr.msk.f32.mxu1 %vm618_vm3, %v901_v34 }
 0x30b   : > { %1165 = vmatmul.mubr.msk.f32.vlgmr.msra.gmra.mxu1 %vm618_vm3, %v902_v35 }
 0x311   : > { %v711_v40 = vpop.permute.xlu0 %710 }
 0x3c7   : > { %v1150_v38 = vpop.f32.mrf.mxu1 }
 0x3c8   : > { %v796_v39 = vadd.f32 %v1150_v38, %v716_v37 }
 0x3c9   : > { %v790_v41 = vpop.f32.mrf.mxu1 }
 0x3ca   : > { %v800_v42 = vmax.f32 %v796_v39, 0.0  ;;  %v791_v43 = vadd.f32 %v790_v41, %v711_v40 }
 0x3cb   : > { %v1166_v54 = vpop.f32.mrf.mxu1 }
 0x3cc   : > { %v799_v44 = vmax.f32 %v791_v43, 0.0  ;;  %803 = vrot.lane.b32.xlu1 %v800_v42, %s1281_s23  ;;  %1151 = vmatprep.subr.mxu0 %v800_v42 }
 0x3cd   : > { %1152 = vmatpush3.msra.mxu0 %v800_v42  ;;  %v987_v57 = vpop.f32.mrf.mxu1 }
 0x3ce   : > { %801 = vrot.lane.b32.xlu0 %v799_v44, %s1281_s23  ;;  %1153 = vmatprep.subr.mxu0 %v799_v44  ;;  %s1504_s23 = scalar_lea.hbm %s1559_s13, %s1103_s17 }
 0x3cf   : > { %1154 = vmatpush3.msra.mxu0 %v799_v44 }
 0x3d0   : > { %809 = vperm.xlu1 %1214, %v700_v45  }
 0x3d2   : > { %814 = vperm.xlu0 %1213, %v701_v46  }
 0x3d4   : > { %907 = vperm.xlu1 %1214, %v903_v47  }
 0x3d6   : > { %912 = vperm.xlu0 %1213, %v904_v48  }
 0x43e   : > { %v804_v49 = vpop.permute.xlu1 %803 }
 0x43f   : > { %1155 = vmatprep.subr.msk.mxu0 %vm704_vm4, %v804_v49 }
 0x440   : > { %v802_v50 = vpop.permute.xlu0 %801  ;;  %1156 = vmatpush3.msk.msra.mxu0 %vm704_vm4, %v804_v49 }
 0x441   : > { %1157 = vmatprep.subr.msk.mxu0 %vm704_vm4, %v802_v50 }
 0x442   : > { %1158 = vmatpush3.msk.msra.mxu0 %vm704_vm4, %v802_v50 }
 0x443   : > { %1160 = vmatmul.mubr.msk.f32.vlgmr.msra.gmra.mxu0 %vm817_vm5, %v699_v51 }
 0x44b   : > { %v810_v53 = vpop.permute.xlu1 %809 }
 0x44d   : > { %v815_v52 = vpop.permute.xlu0 %814 }
 0x44f   : > { %v908_v59 = vpop.permute.xlu1 %907 }
 0x450   : > { %v988_v0 = vadd.f32 %v987_v57, %v908_v59 }
 0x451   : > { %v913_v55 = vpop.permute.xlu0 %912 }
 0x452   : > { %v993_v61 = vadd.f32 %v1166_v54, %v913_v55 }
 0x503   : > { %v1161_v56 = vpop.f32.mrf.mxu0 }
 0x504   : > { %v896_v58 = vadd.f32 %v1161_v56, %v815_v52 }
 0x505   : > { %v890_v60 = vpop.f32.mrf.mxu0 }
 0x506   : > { %v900_v62 = vmax.f32 %v896_v58, 0.0  ;;  %v891_v63 = vadd.f32 %v890_v60, %v810_v53 }
 0x508   : > { %v997_v1 = vadd.f32 %v993_v61, %v900_v62  ;;  %v899_v2 = vmax.f32 %v891_v63, 0.0 }
 0x50a   : > { %v999_v3 = vmax.f32 %v997_v1, 0.0  ;;  %v996_v4 = vadd.f32 %v988_v0, %v899_v2 }
 0x50c   : > { %1001 = vst [vmem:[%s431_s21 + $0x8] sm:$0xff] %v999_v3  ;;  %v998_v5 = vmax.f32 %v996_v4, 0.0 }
 0x50e   : > { %1000 = vst [vmem:[%s431_s21] sm:$0xff] %v998_v5 }
 0x50f   : > { %1228 = shalt.err (!%p1225_p3)
}
 0x510   : > { %s1229_s20 = scalar_lea.hbm %s1504_s23, 256  ;;  %s1233_s24 = scalar_lea.hbm %s1559_s13, 512 }
 0x511   : > { %p1230_p4 = scmp.ne.s32.totalorder %s1504_s23, %s1229_s20  ;;  %p1234_p9 = scmp.lt.s32.totalorder %s1504_s23, %s1559_s13 }
 0x512   : > { %p1235_p10 = scmp.lt.s32.totalorder %s1233_s24, %s1229_s20 }
 0x513   : > { %p1231_p7 = pnand %p1230_p4, %p1393_p5 }
 0x514   : > { %p1236_p11 = por %p1235_p10, %p1234_p9 }
 0x515   : > { %p1232_p8 = pneg %p1231_p7 }
 0x517   : > { %p1237_p12 = pnand %p1236_p11, %p1232_p8 }
 0x519   : > { %1240 = shalt.err (!%p1237_p12)
}
 0x51a   : > { %s1283_s0 = smov 128   ;;  %s1284_s1 = smov 8  }
 0x51b   : > { %1167 = dma.vmem_to_hbm [thread:$0]  (%p1393_p5), %s1499_s22, 256, %s1504_s23, %s1506_s16, %s1283_s0, %s1283_s0, %s1284_s1  }
 0x51c PF: > { %p1173_p13 = scmp.ge.s32.totalorder %s1275_s28, 2  ;;  %s1031_s30 = sand.u32 1, %s1263_s25  }
 0x51d   : > { %s1032_s20 = scalar_lea.sflag [#allocation3], %s1031_s30 }
 0x51e   : > { %p1170_p0 = pnand %p1173_p13, %p1397_p6 }
 0x520   : > { %p1171_p1 = pneg %p1170_p0 }
 0x522   : > { %1258 = dma.done.wait (%p1171_p1), %s1032_s20, 256  }
 0x523   : > { %1260 = vsyncadd (%p1171_p1), %s1032_s20, 4294967040  ;;  %s1567_s21 = sld [smem:[#allocation5_spill]]  ;;  %p23_p2 = scmp.ge.s32.totalorder %s1380_s14, 4  }
 0x524   : > { %s1568_s25 = smov %s1267_s26  ;;  %s1569_s26 = smov %s1271_s27 }
 0x525   : > { %s1571_s28 = smov %s1380_s14  ;;  %25 = sbr.rel (!%p23_p2) target bundleno = 6 (0x6), region = 107 }
 0x529   : > { %s1570_s27 = smov %s1567_s21 }
 0x52a   :  { %1037 = vsyncpa [#allocation3], 1 }
 0x52b   :  { %1039 = vsyncpa [#allocation3 + $0x1], 1 }

</bundles_post_ra>
